<compile_context>
chip_gen: v5e
topology: v5e:2x2
jax: 0.10.0
libtpu: 0.0.40
codegen_flags: <defaults>
</compile_context>

<pallas_src>
import functools

import jax
import jax.numpy as jnp
from jax.experimental import pallas as pl
from jax.experimental.pallas import tpu as pltpu


def _round_up(v: int, m: int) -> int:
    return ((v + m - 1) // m) * m


def _sage_layer_kernel(adj_ref, xn_ref, xs_ref, invdeg_ref, w_ref, b_ref,
                       o_ref, acc_ref, *, mode, nclass):
    """One SAGEConv layer, tiled over (row_tiles, neighbor_tiles).

    adj_ref    : (TM, TK)            bf16   adjacency tile (row tile i, col tile k)
    xn_ref     : (TK, F_in_pad)      bf16   neighbor features for this k tile
    xs_ref     : (TM, F_in_pad)      bf16   root ("self") features for row tile i
    invdeg_ref : (TM, 1)             f32    1 / max(deg, 1) for row tile i
    w_ref      : (2*F_in_pad, F_out) bf16   fused [W_l; W_r]
    b_ref      : (1, F_out_pad)      f32    bias of lin_l
    o_ref      : (TM, F_out_pad)            layer output tile
    acc_ref    : (TM, F_in_pad)      f32    VMEM accumulator for adj @ x
    """
    k = pl.program_id(1)

    @pl.when(k == 0)
    def _():
        acc_ref[...] = jnp.zeros_like(acc_ref)

    # Partial neighbor-sum for this k tile (bf16 MXU, f32 accumulation).
    acc_ref[...] += jnp.dot(adj_ref[...], xn_ref[...],
                            preferred_element_type=jnp.float32)

    @pl.when(k == pl.num_programs(1) - 1)
    def _():
        # Mean aggregation: scale accumulated neighbor sum by precomputed 1/deg.
        agg = acc_ref[...] * invdeg_ref[...]                      # (TM, F_in_pad) f32
        # Fused projection: [agg | x_self] @ [W_l ; W_r]  (+ bias, added once here).
        hin = jnp.concatenate(
            [agg.astype(jnp.bfloat16), xs_ref[...]], axis=-1)     # (TM, 2*F_in_pad)
        h = jnp.dot(hin, w_ref[...], preferred_element_type=jnp.float32)
        h = h + b_ref[...]

        if mode == "relu":
            h = jnp.maximum(h, 0.0)
            # TODO(synk): dropout omitted — inference mode (F.dropout w/ training=False is identity).
        else:  # "log_softmax" over the real class columns only (mask lane padding).
            col = jax.lax.broadcasted_iota(jnp.int32, h.shape, 1)
            h = jnp.where(col < nclass, h, jnp.float32(-1e30))
            m = jnp.max(h, axis=-1, keepdims=True)
            z = h - m
            lse = jnp.log(jnp.sum(jnp.exp(z), axis=-1, keepdims=True))
            h = z - lse

        o_ref[...] = h.astype(o_ref.dtype)


def sage_conv_layer(x_pad, adj_pad, inv_deg_pad, w_cat, b_pad, *,
                    mode, nclass, tm, tk, out_dtype):
    """Run one tiled SAGEConv layer via pallas_call."""
    n_pad = adj_pad.shape[0]
    f_in_pad = x_pad.shape[1]
    f_out_pad = w_cat.shape[1]
    grid = (n_pad // tm, n_pad // tk)

    kernel = functools.partial(_sage_layer_kernel, mode=mode, nclass=nclass)
    return pl.pallas_call(
        kernel,
        out_shape=jax.ShapeDtypeStruct((n_pad, f_out_pad), out_dtype),
        grid_spec=pltpu.PrefetchScalarGridSpec(
            num_scalar_prefetch=0,
            grid=grid,
            in_specs=[
                pl.BlockSpec((tm, tk), lambda i, k: (i, k)),                  # adj tile
                pl.BlockSpec((tk, f_in_pad), lambda i, k: (k, 0)),            # neighbor feats
                pl.BlockSpec((tm, f_in_pad), lambda i, k: (i, 0)),            # self feats
                pl.BlockSpec((tm, 1), lambda i, k: (i, 0)),                   # 1/deg
                pl.BlockSpec((2 * f_in_pad, f_out_pad), lambda i, k: (0, 0)),  # fused W
                pl.BlockSpec((1, f_out_pad), lambda i, k: (0, 0)),            # bias
            ],
            out_specs=pl.BlockSpec((tm, f_out_pad), lambda i, k: (i, 0)),
            scratch_shapes=[pltpu.VMEM((tm, f_in_pad), jnp.float32)],
        ),
        compiler_params=pltpu.CompilerParams(
            dimension_semantics=("parallel", "arbitrary"),
            vmem_limit_bytes=48 * 1024 * 1024,
        ),
    )(adj_pad, x_pad, x_pad, inv_deg_pad, w_cat, b_pad)


def init_sage_products_params(key, nfeat, nhid, nclass, num_layers):
    """Deterministic Glorot-ish init for the SAGEConv stack: list of (W_l, b_l, W_r)."""
    dims = [nfeat] + [nhid] * (num_layers - 1) + [nclass]
    params = []
    for i in range(num_layers):
        f_in, f_out = dims[i], dims[i + 1]
        key, k1, k2 = jax.random.split(key, 3)
        scale = (2.0 / (f_in + f_out)) ** 0.5
        w_l = scale * jax.random.normal(k1, (f_in, f_out), jnp.float32)
        w_r = scale * jax.random.normal(k2, (f_in, f_out), jnp.float32)
        b_l = jnp.zeros((f_out,), jnp.float32)
        params.append((w_l, b_l, w_r))
    return params


def sage_products_forward(x, adj, params):
    """Forward pass matching SAGE_products.forward (inference mode)."""
    n, f_in = x.shape
    nclass = params[-1][0].shape[1]

    # --- One-time preprocessing (hoisted out of the per-layer kernels) ---------------
    # NOTE: matches PyG mean aggregation for binary adjacency (deg = neighbor count).
    deg = jnp.sum(adj.astype(jnp.float32), axis=-1, keepdims=True)
    inv_deg = 1.0 / jnp.maximum(deg, 1.0)

    # Tile sizes: 512 on real graphs, shrink for tiny inputs. Node dim padded to the tile.
    tile = 512 if n >= 512 else 128
    tm = tk = tile
    n_pad = _round_up(n, tile)

    adj_pad = jnp.zeros((n_pad, n_pad), jnp.bfloat16)
    adj_pad = adj_pad.at[:n, :n].set(adj.astype(jnp.bfloat16))      # 0/1 -> exact in bf16
    inv_deg_pad = jnp.zeros((n_pad, 1), jnp.float32).at[:n].set(inv_deg)

    f_in_pad = _round_up(f_in, 128)
    h = jnp.zeros((n_pad, f_in_pad), jnp.bfloat16)
    h = h.at[:n, :f_in].set(x.astype(jnp.bfloat16))

    num_layers = len(params)
    for li, (w_l, b_l, w_r) in enumerate(params):
        f_i, f_o = w_l.shape
        f_i_pad = _round_up(f_i, 128)
        f_o_pad = _round_up(f_o, 128)
        assert f_i_pad == h.shape[1]

        # Fused, zero-padded projection weight: rows [0:f_i_pad) -> W_l, [f_i_pad:) -> W_r.
        w_cat = jnp.zeros((2 * f_i_pad, f_o_pad), jnp.bfloat16)
        w_cat = w_cat.at[:f_i, :f_o].set(w_l.astype(jnp.bfloat16))
        w_cat = w_cat.at[f_i_pad:f_i_pad + f_i, :f_o].set(w_r.astype(jnp.bfloat16))
        b_pad = jnp.zeros((1, f_o_pad), jnp.float32).at[0, :f_o].set(b_l)

        is_last = li == num_layers - 1
        h = sage_conv_layer(
            h, adj_pad, inv_deg_pad, w_cat, b_pad,
            mode="log_softmax" if is_last else "relu",
            nclass=f_o, tm=tm, tk=tk,
            out_dtype=jnp.float32 if is_last else jnp.bfloat16,
        )

    return h[:n, :nclass]


if __name__ == "__main__":
    key = jax.random.PRNGKey(0)

    # Small synthetic graph: N nodes, nfeat input features.
    N, NFEAT, NHID, NCLASS, NUM_LAYERS = 16, 16, 32, 8, 3

    key, kx, ka, kp = jax.random.split(key, 4)
    x = jax.random.normal(kx, (N, NFEAT), jnp.float32)
    # Random binary adjacency (dense).
    adj = (jax.random.uniform(ka, (N, N)) < 0.3).astype(jnp.float32)

    params = init_sage_products_params(kp, NFEAT, NHID, NCLASS, NUM_LAYERS)

    out = sage_products_forward(x, adj, params)
    out = jax.block_until_ready(out)

    # Sanity: log_softmax rows must sum (in prob space) to ~1.
    row_sums = jnp.sum(jnp.exp(out), axis=-1)
    assert out.shape == (N, NCLASS)
    assert bool(jnp.all(jnp.abs(row_sums - 1.0) < 1e-3))
    assert bool(jnp.all(jnp.isfinite(out)))

    print("KERNEL_OK")
</pallas_src>

<mosaic_0001>
module attributes {stable_mosaic.version = 11 : i64} {
  func.func @_sage_layer_kernel(%arg0: i32, %arg1: i32, %arg2: memref<128x128xbf16, #tpu.memory_space<vmem>>, %arg3: memref<128x128xbf16, #tpu.memory_space<vmem>>, %arg4: memref<128x128xbf16, #tpu.memory_space<vmem>>, %arg5: memref<128x1xf32, #tpu.memory_space<vmem>>, %arg6: memref<256x128xbf16, #tpu.memory_space<vmem>>, %arg7: memref<1x128xf32, #tpu.memory_space<vmem>>, %arg8: memref<128x128xbf16, #tpu.memory_space<vmem>>, %arg9: memref<128x128xf32, #tpu.memory_space<vmem>>) attributes {dimension_semantics = [#tpu.dimension_semantics<parallel>, #tpu.dimension_semantics<arbitrary>], iteration_bounds = array<i64: 1, 1>, scalar_prefetch = 0 : i64, scratch_operands = 1 : i64, tpu.core_type = #tpu.core_type<tc>, window_params = [{transform_indices = @transform_0, window_bounds = array<i64: 128, 128>}, {transform_indices = @transform_1, window_bounds = array<i64: 128, 128>}, {transform_indices = @transform_2, window_bounds = array<i64: 128, 128>}, {transform_indices = @transform_3, window_bounds = array<i64: 128, 1>}, {pipeline_mode = #tpu.pipeline_mode<synchronous>, transform_indices = @transform_4, window_bounds = array<i64: 256, 128>}, {pipeline_mode = #tpu.pipeline_mode<synchronous>, transform_indices = @transform_5, window_bounds = array<i64: 1, 128>}, {transform_indices = @transform_6, window_bounds = array<i64: 128, 128>}]} {
    %c0_i32 = arith.constant 0 : i32
    %0 = arith.cmpi eq, %arg1, %c0_i32 : i32
    %1 = arith.extui %0 : i1 to i32
    %c0_i32_0 = arith.constant 0 : i32
    %2 = arith.cmpi ne, %1, %c0_i32_0 : i32
    scf.if %2 {
      %cst_10 = arith.constant 0.000000e+00 : f32
      %12 = vector.broadcast %cst_10 : f32 to vector<128x128xf32>
      %c0_11 = arith.constant 0 : index
      %c0_12 = arith.constant 0 : index
      %13 = vector.load %arg9[%c0_11, %c0_12] : memref<128x128xf32, #tpu.memory_space<vmem>>, vector<128x128xf32>
      tpu.vector_store %arg9[%c0_11, %c0_12], %12 {strides = array<i32>} : memref<128x128xf32, #tpu.memory_space<vmem>>, vector<128x128xf32>,
    } else {
    }
    %c0 = arith.constant 0 : index
    %c0_1 = arith.constant 0 : index
    %3 = vector.load %arg9[%c0, %c0_1] : memref<128x128xf32, #tpu.memory_space<vmem>>, vector<128x128xf32>
    %c0_2 = arith.constant 0 : index
    %c0_3 = arith.constant 0 : index
    %4 = vector.load %arg2[%c0_2, %c0_3] : memref<128x128xbf16, #tpu.memory_space<vmem>>, vector<128x128xbf16>
    %c0_4 = arith.constant 0 : index
    %c0_5 = arith.constant 0 : index
    %5 = vector.load %arg3[%c0_4, %c0_5] : memref<128x128xbf16, #tpu.memory_space<vmem>>, vector<128x128xbf16>
    %cst = arith.constant dense<0.000000e+00> : vector<128x128xf32>
    %6 = tpu.matmul %4, %5, %cst {dimension_numbers = #tpu.dot_dimension_numbers<[1], [0], [0], [1], [0, 0, 1, 1], [], []>} : vector<128x128xbf16>, vector<128x128xbf16>, vector<128x128xf32> -> vector<128x128xf32>
    %7 = arith.addf %3, %6 : vector<128x128xf32>
    %c0_6 = arith.constant 0 : index
    %c0_7 = arith.constant 0 : index
    %8 = vector.load %arg9[%c0_6, %c0_7] : memref<128x128xf32, #tpu.memory_space<vmem>>, vector<128x128xf32>
    tpu.vector_store %arg9[%c0_6, %c0_7], %7 {strides = array<i32>} : memref<128x128xf32, #tpu.memory_space<vmem>>, vector<128x128xf32>,
    %c0_i32_8 = arith.constant 0 : i32
    %9 = arith.cmpi eq, %arg1, %c0_i32_8 : i32
    %10 = arith.extui %9 : i1 to i32
    %c0_i32_9 = arith.constant 0 : i32
    %11 = arith.cmpi ne, %10, %c0_i32_9 : i32
    scf.if %11 {
      %c0_10 = arith.constant 0 : index
      %c0_11 = arith.constant 0 : index
      %12 = vector.load %arg9[%c0_10, %c0_11] : memref<128x128xf32, #tpu.memory_space<vmem>>, vector<128x128xf32>
      %c0_12 = arith.constant 0 : index
      %c0_13 = arith.constant 0 : index
      %13 = vector.load %arg5[%c0_12, %c0_13] : memref<128x1xf32, #tpu.memory_space<vmem>>, vector<128x1xf32>
      %14 = vector.broadcast %13 : vector<128x1xf32> to vector<128x128xf32>
      %15 = arith.mulf %12, %14 : vector<128x128xf32>
      %16 = arith.truncf %15 : vector<128x128xf32> to vector<128x128xbf16>
      %c0_14 = arith.constant 0 : index
      %c0_15 = arith.constant 0 : index
      %17 = vector.load %arg4[%c0_14, %c0_15] : memref<128x128xbf16, #tpu.memory_space<vmem>>, vector<128x128xbf16>
      %18 = tpu.concatenate %16, %17 in 1 : vector<128x128xbf16>, vector<128x128xbf16> -> vector<128x256xbf16>
      %c0_16 = arith.constant 0 : index
      %c0_17 = arith.constant 0 : index
      %19 = vector.load %arg6[%c0_16, %c0_17] : memref<256x128xbf16, #tpu.memory_space<vmem>>, vector<256x128xbf16>
      %cst_18 = arith.constant dense<0.000000e+00> : vector<128x128xf32>
      %20 = tpu.matmul %18, %19, %cst_18 {dimension_numbers = #tpu.dot_dimension_numbers<[1], [0], [0], [1], [0, 0, 1, 1], [], []>} : vector<128x256xbf16>, vector<256x128xbf16>, vector<128x128xf32> -> vector<128x128xf32>
      %c0_19 = arith.constant 0 : index
      %c0_20 = arith.constant 0 : index
      %21 = vector.load %arg7[%c0_19, %c0_20] : memref<1x128xf32, #tpu.memory_space<vmem>>, vector<1x128xf32>
      %22 = vector.broadcast %21 : vector<1x128xf32> to vector<128x128xf32>
      %23 = arith.addf %20, %22 : vector<128x128xf32>
      %cst_21 = arith.constant 0.000000e+00 : f32
      %24 = vector.broadcast %cst_21 : f32 to vector<128x128xf32>
      %25 = arith.maximumf %23, %24 : vector<128x128xf32>
      %26 = arith.truncf %25 : vector<128x128xf32> to vector<128x128xbf16>
      %c0_22 = arith.constant 0 : index
      %c0_23 = arith.constant 0 : index
      %27 = vector.load %arg8[%c0_22, %c0_23] : memref<128x128xbf16, #tpu.memory_space<vmem>>, vector<128x128xbf16>
      tpu.vector_store %arg8[%c0_22, %c0_23], %26 {strides = array<i32>} : memref<128x128xbf16, #tpu.memory_space<vmem>>, vector<128x128xbf16>,
    } else {
    }
    return
  }
  func.func @transform_0(%arg0: i32, %arg1: i32) -> (i32, i32) {
    %c0_i32 = arith.constant 0 : i32
    return %arg0, %arg1 : i32, i32
  }
  func.func @transform_1(%arg0: i32, %arg1: i32) -> (i32, i32) {
    %c0_i32 = arith.constant 0 : i32
    %c0_i32_0 = arith.constant 0 : i32
    return %arg1, %c0_i32 : i32, i32
  }
  func.func @transform_2(%arg0: i32, %arg1: i32) -> (i32, i32) {
    %c0_i32 = arith.constant 0 : i32
    %c0_i32_0 = arith.constant 0 : i32
    return %arg0, %c0_i32 : i32, i32
  }
  func.func @transform_3(%arg0: i32, %arg1: i32) -> (i32, i32) {
    %c0_i32 = arith.constant 0 : i32
    %c0_i32_0 = arith.constant 0 : i32
    return %arg0, %c0_i32 : i32, i32
  }
  func.func @transform_4(%arg0: i32, %arg1: i32) -> (i32, i32) {
    %c0_i32 = arith.constant 0 : i32
    %c0_i32_0 = arith.constant 0 : i32
    %c0_i32_1 = arith.constant 0 : i32
    return %c0_i32, %c0_i32_0 : i32, i32
  }
  func.func @transform_5(%arg0: i32, %arg1: i32) -> (i32, i32) {
    %c0_i32 = arith.constant 0 : i32
    %c0_i32_0 = arith.constant 0 : i32
    %c0_i32_1 = arith.constant 0 : i32
    return %c0_i32, %c0_i32_0 : i32, i32
  }
  func.func @transform_6(%arg0: i32, %arg1: i32) -> (i32, i32) {
    %c0_i32 = arith.constant 0 : i32
    %c0_i32_0 = arith.constant 0 : i32
    return %arg0, %c0_i32 : i32, i32
  }
}

</mosaic_0001>

<bundles_post_ra>
// kernel: tpu_custom_call.1
= control target key start
LH: loop header
LB: loop body
LE: loop exit
PB: predicated region body
PF: predicated region fallthrough
CT: control target
= control target key end

     0   :  { %11 = vsyncpa [#allocation4], 0  ;;  %s1440_s0 = inlined_call_operand.hbm [shape: bf16[128,128], index: 0, kind: input, shape index: {}]   ;;  %s1441_s1 = inlined_call_operand.hbm [shape: bf16[128,128], index: 1, kind: input, shape index: {}]   ;;  %s1442_s2 = inlined_call_operand.hbm [shape: bf16[128,128], index: 2, kind: input, shape index: {}]   ;;  %s1443_s3 = inlined_call_operand.vmem [shape: f32[128,1], index: 3, kind: input, shape index: {}]   ;;  %s1444_s4 = inlined_call_operand.vmem [shape: bf16[256,128], index: 4, kind: input, shape index: {}]   ;;  %s1445_s5 = inlined_call_operand.vmem [shape: f32[1,128], index: 5, kind: input, shape index: {}]   ;;  %s1446_s6 = inlined_call_operand.hbm [shape: bf16[128,128], index: 6, kind: output, shape index: {}]  }
   0x1   :  { %12 = vsyncpa [#allocation7], 0 }
   0x2   :  { %13 = vsyncpa [#allocation5], 0  ;;  %s31_s23 = sshll.u32 %s1441_s1, 4  ;;  %s1257_s24 = smov [#allocation6]   ;;  %s32_s23 = int_to_ptr.hbm [resolvable:$true] %s31_s23 }
   0x3   :  { %s33_s25 = sshll.u32 %s1257_s24, 4  ;;  %s18_s28 = sshll.u32 %s1440_s0, 4  ;;  %s34_s25 = int_to_ptr.vmem [resolvable:$true] %s33_s25  ;;  %s19_s28 = int_to_ptr.hbm [resolvable:$true] %s18_s28 }
   0x4   :  { %s1258_s29 = smov 64   ;;  %s1259_s30 = smov 4  }
   0x5   :  { %39 = dma.hbm_to_vmem [thread:$0]  %s32_s23, 1024, %s34_s25, [#allocation7], %s1258_s29, %s1258_s29, %s1259_s30  }
   0x6   :  { %s1260_s7 = smov [#allocation3]   ;;  %s44_s1 = sshll.u32 %s1442_s2, 4  ;;  %s45_s1 = int_to_ptr.hbm [resolvable:$true] %s44_s1 }
   0x7   :  { %s20_s8 = sshll.u32 %s1260_s7, 4  ;;  %s1261_s0 = smov [#allocation8]   ;;  %s21_s8 = int_to_ptr.vmem [resolvable:$true] %s20_s8 }
   0x8   :  { %26 = dma.hbm_to_vmem [thread:$0]  %s19_s28, 1024, %s21_s8, [#allocation4], %s1258_s29, %s1258_s29, %s1259_s30  }
   0x9   :  { %s46_s11 = sshll.u32 %s1261_s0, 4  ;;  %s47_s11 = int_to_ptr.vmem [resolvable:$true] %s46_s11 }
   0xa   :  { %52 = dma.hbm_to_vmem [thread:$0]  %s45_s1, 1024, %s47_s11, [#allocation7], %s1258_s29, %s1258_s29, %s1259_s30  }
   0xb   :  { %1251 = dma.done.wait [#allocation4], 1024  }
   0xc   :  { %1252 = vsyncadd [#allocation4], 4294966272 }
   0xd   :  { %1253 = dma.done.wait [#allocation7], 2048  }
   0xe   :  { %1254 = vsyncadd [#allocation7], 4294965248  ;;  %v1262_v0 = vmov 0   ;;  %v1048_v1 = vld [vmem:[#allocation6 + $0x38] sm:$0xff]  ;;  %v335_v2 = vld [vmem:[%s1443_s3] sm:$0xff]  ;;  %s859_s27 = sshll.u32 %s1446_s6, 4  ;;  %s860_s27 = int_to_ptr.hbm [resolvable:$true] %s859_s27 }
   0xf   :  { %1151 = vset.pattern.permute.xlu0 %v1262_v0  ;;  %1152 = vset.pattern.permute.xlu1 %v1262_v0  ;;  %v1047_v3 = vld [vmem:[#allocation6 + $0x30] sm:$0xff]  ;;  %v1046_v5 = vld [vmem:[#allocation6 + $0x28] sm:$0xff]  ;;  %v338_v7 = vld [vmem:[%s1443_s3 + $0x18] sm:$0xff] }
  0x10   :  { %1153 = vset.pattern.permute.xlu2 %v1262_v0  ;;  %353 = vperm.xlu0 %1151, %v335_v2   ;;  %v337_v4 = vld [vmem:[%s1443_s3 + $0x10] sm:$0xff]  ;;  %v336_v6 = vld [vmem:[%s1443_s3 + $0x8] sm:$0xff]  ;;  %v1045_v8 = vld [vmem:[#allocation6 + $0x20] sm:$0xff] }
  0x11   :  { %235 = vmatpush.bf16.msra.mxu0 %v1048_v1  ;;  %1120 = vmatpush.bf16.msra.mxu3 %v1048_v1  ;;  %v1044_v9 = vld [vmem:[#allocation6 + $0x18] sm:$0xff]  ;;  %v339_v10 = vld [vmem:[%s1443_s3 + $0x20] sm:$0xff]  ;;  %v340_v11 = vld [vmem:[%s1443_s3 + $0x28] sm:$0xff] }
  0x12   :  { %363 = vperm.xlu1 %1152, %v337_v4   ;;  %v347_v12 = vld [vmem:[%s1443_s3 + $0x60] sm:$0xff]  ;;  %v1043_v13 = vld [vmem:[#allocation6 + $0x10] sm:$0xff]  ;;  %v1042_v14 = vld [vmem:[#allocation6 + $0x8] sm:$0xff] }
  0x13   :  { %413 = vperm.xlu2 %1153, %v347_v12   ;;  %v350_v15 = vld [vmem:[%s1443_s3 + $0x78] sm:$0xff]  ;;  %v341_v16 = vld [vmem:[%s1443_s3 + $0x30] sm:$0xff]  ;;  %v1041_v17 = vld [vmem:[#allocation6] sm:$0xff] }
  0x14   :  { %v1033_v18 = vld [vmem:[#allocation3] sm:$0xff]  ;;  %v1039_v19 = vld [vmem:[#allocation3 + $0x30] sm:$0xff]  ;;  %v344_v21 = vld [vmem:[%s1443_s3 + $0x48] sm:$0xff] }
  0x15   :  { %236 = vmatpush.bf16.msra.mxu0 %v1047_v3  ;;  %1121 = vmatpush.bf16.msra.mxu3 %v1047_v3  ;;  %v343_v20 = vld [vmem:[%s1443_s3 + $0x40] sm:$0xff]  ;;  %v348_v22 = vld [vmem:[%s1443_s3 + $0x68] sm:$0xff]  ;;  %v346_v23 = vld [vmem:[%s1443_s3 + $0x58] sm:$0xff] }
  0x16   :  { %v349_v24 = vld [vmem:[%s1443_s3 + $0x70] sm:$0xff]  ;;  %v1034_v25 = vld [vmem:[#allocation3 + $0x8] sm:$0xff]  ;;  %v1040_v26 = vld [vmem:[#allocation3 + $0x38] sm:$0xff] }
  0x17   :  { %v342_v27 = vld [vmem:[%s1443_s3 + $0x38] sm:$0xff]  ;;  %v345_v28 = vld [vmem:[%s1443_s3 + $0x50] sm:$0xff]  ;;  %v1037_v32 = vld [vmem:[#allocation3 + $0x20] sm:$0xff] }
  0x18   :  { %358 = vperm.xlu0 %1151, %v336_v6   ;;  %v1035_v29 = vld [vmem:[#allocation3 + $0x10] sm:$0xff]  ;;  %v1036_v30 = vld [vmem:[#allocation3 + $0x18] sm:$0xff]  ;;  %v1070_v34 = vld [vmem:[%s1444_s4 + $0x68] sm:$0xff] }
  0x19   :  { %237 = vmatpush.bf16.msra.mxu0 %v1046_v5  ;;  %1122 = vmatpush.bf16.msra.mxu3 %v1046_v5  ;;  %v1072_v31 = vld [vmem:[%s1444_s4 + $0x78] sm:$0xff]  ;;  %v1071_v33 = vld [vmem:[%s1444_s4 + $0x70] sm:$0xff]  ;;  %v1069_v36 = vld [vmem:[%s1444_s4 + $0x60] sm:$0xff] }
  0x1a   :  { %368 = vperm.xlu1 %1152, %v338_v7   ;;  %756 = vmatpush.bf16.msra.mxu2 %v1072_v31  ;;  %v1064_v35 = vld [vmem:[%s1444_s4 + $0x38] sm:$0xff]  ;;  %v1038_v37 = vld [vmem:[#allocation3 + $0x28] sm:$0xff]  ;;  %v1063_v38 = vld [vmem:[%s1444_s4 + $0x30] sm:$0xff] }
  0x1b   :  { %418 = vperm.xlu2 %1153, %v348_v22   ;;  %707 = vmatpush.bf16.msra.mxu1 %v1064_v35  ;;  %v1068_v39 = vld [vmem:[%s1444_s4 + $0x58] sm:$0xff]  ;;  %v1062_v40 = vld [vmem:[%s1444_s4 + $0x28] sm:$0xff]  ;;  %v1067_v41 = vld [vmem:[%s1444_s4 + $0x50] sm:$0xff] }
  0x1c   :  { %v1061_v42 = vld [vmem:[%s1444_s4 + $0x20] sm:$0xff]  ;;  %v1066_v43 = vld [vmem:[%s1444_s4 + $0x48] sm:$0xff]  ;;  %v1060_v44 = vld [vmem:[%s1444_s4 + $0x18] sm:$0xff] }
  0x1d   :  { %238 = vmatpush.bf16.msra.mxu0 %v1045_v8  ;;  %1123 = vmatpush.bf16.msra.mxu3 %v1045_v8  ;;  %v1065_v45 = vld [vmem:[%s1444_s4 + $0x40] sm:$0xff]  ;;  %v1059_v47 = vld [vmem:[%s1444_s4 + $0x10] sm:$0xff]  ;;  %v1058_v48 = vld [vmem:[%s1444_s4 + $0x8] sm:$0xff] }
  0x1e   :  { %757 = vmatpush.bf16.msra.mxu2 %v1071_v33  ;;  %v1049_v46 = vld [vmem:[#allocation8] sm:$0xff]  ;;  %v1050_v50 = vld [vmem:[#allocation8 + $0x8] sm:$0xff]  ;;  %v1051_v53 = vld [vmem:[#allocation8 + $0x10] sm:$0xff] }
  0x1f   :  { %708 = vmatpush.bf16.msra.mxu1 %v1063_v38  ;;  %v1057_v49 = vld [vmem:[%s1444_s4] sm:$0xff] }
  0x20   :  { %373 = vperm.xlu0 %1151, %v339_v10  }
  0x21   :  { %239 = vmatpush.bf16.msra.mxu0 %v1044_v9  ;;  %1124 = vmatpush.bf16.msra.mxu3 %v1044_v9 }
  0x22   :  { %378 = vperm.xlu1 %1152, %v340_v11   ;;  %758 = vmatpush.bf16.msra.mxu2 %v1070_v34  ;;  %v1052_v11 = vld [vmem:[#allocation8 + $0x18] sm:$0xff] }
  0x23   :  { %423 = vperm.xlu2 %1153, %v349_v24   ;;  %709 = vmatpush.bf16.msra.mxu1 %v1062_v40 }
  0x25   :  { %240 = vmatpush.bf16.msra.mxu0 %v1043_v13  ;;  %1125 = vmatpush.bf16.msra.mxu3 %v1043_v13 }
  0x26   :  { %759 = vmatpush.bf16.msra.mxu2 %v1069_v36 }
  0x27   :  { %710 = vmatpush.bf16.msra.mxu1 %v1061_v42 }
  0x28   :  { %428 = vperm.xlu0 %1151, %v350_v15  }
  0x29   :  { %241 = vmatpush.bf16.msra.mxu0 %v1042_v14  ;;  %1126 = vmatpush.bf16.msra.mxu3 %v1042_v14 }
  0x2a   :  { %383 = vperm.xlu1 %1152, %v341_v16   ;;  %760 = vmatpush.bf16.msra.mxu2 %v1068_v39 }
  0x2b   :  { %388 = vperm.xlu2 %1153, %v342_v27   ;;  %711 = vmatpush.bf16.msra.mxu1 %v1060_v44 }
  0x2d   :  { %242 = vmatpush.bf16.msra.mxu0 %v1041_v17  ;;  %1127 = vmatpush.bf16.msra.mxu3 %v1041_v17 }
  0x2e   :  { %761 = vmatpush.bf16.msra.mxu2 %v1067_v41 }
  0x2f   :  { %712 = vmatpush.bf16.msra.mxu1 %v1059_v47 }
  0x30   :  { %243 = vmatmul.bf16.vlgmr.msra.gmra.mxu0 %v1033_v18  ;;  %273 = vmatmul.bf16.vlgmr.msra.gmra.mxu3 %v1039_v19 }
  0x31   :  { %393 = vperm.xlu0 %1151, %v343_v20   ;;  %1128 = vmatpush.bf16.msrb.mxu3 %v1064_v35 }
  0x32   :  { %398 = vperm.xlu1 %1152, %v344_v21   ;;  %762 = vmatpush.bf16.msra.mxu2 %v1066_v43 }
  0x33   :  { %403 = vperm.xlu2 %1153, %v345_v28   ;;  %713 = vmatpush.bf16.msra.mxu1 %v1058_v48 }
  0x35   :  { %1129 = vmatpush.bf16.msrb.mxu3 %v1063_v38 }
  0x36   :  { %763 = vmatpush.bf16.msra.mxu2 %v1065_v45 }
  0x37   :  { %714 = vmatpush.bf16.msra.mxu1 %v1057_v49 }
  0x39   :  { %408 = vperm.xlu0 %1151, %v346_v23   ;;  %1130 = vmatpush.bf16.msrb.mxu3 %v1062_v40 }
  0x3a   :  { %764 = vmatmul.bf16.vlgmr.msra.gmra.mxu2 %v1049_v46  ;;  %v1055_v46 = vld [vmem:[#allocation8 + $0x30] sm:$0xff] }
  0x3d   :  { %1131 = vmatpush.bf16.msrb.mxu3 %v1061_v42 }
  0x40   :  { %248 = vmatmul.bf16.gmra.mxu0 %v1034_v25  ;;  %278 = vmatmul.bf16.gmra.mxu3 %v1040_v26 }
  0x41   :  { %1132 = vmatpush.bf16.msrb.mxu3 %v1060_v44 }
  0x45   :  { %1133 = vmatpush.bf16.msrb.mxu3 %v1059_v47  ;;  %v1054_v47 = vld [vmem:[#allocation8 + $0x28] sm:$0xff] }
  0x49   :  { %1134 = vmatpush.bf16.msrb.mxu3 %v1058_v48 }
  0x4a   :  { %769 = vmatmul.bf16.gmra.mxu2 %v1050_v50 }
  0x4d   :  { %1135 = vmatpush.bf16.msrb.mxu3 %v1057_v49 }
  0x50   :  { %253 = vmatmul.bf16.gmra.mxu0 %v1035_v29 }
  0x51   :  { %1136 = vmatpush.bf16.msra.mxu3 %v1072_v31 }
  0x55   :  { %1137 = vmatpush.bf16.msra.mxu3 %v1071_v33 }
  0x59   :  { %1138 = vmatpush.bf16.msra.mxu3 %v1070_v34  ;;  %v1053_v34 = vld [vmem:[#allocation8 + $0x20] sm:$0xff] }
  0x5a   :  { %774 = vmatmul.bf16.gmra.mxu2 %v1051_v53 }
  0x5d   :  { %1139 = vmatpush.bf16.msra.mxu3 %v1069_v36 }
  0x60   :  { %258 = vmatmul.bf16.gmra.mxu0 %v1036_v30 }
  0x61   :  { %1140 = vmatpush.bf16.msra.mxu3 %v1068_v39 }
  0x65   :  { %1141 = vmatpush.bf16.msra.mxu3 %v1067_v41 }
  0x69   :  { %1142 = vmatpush.bf16.msra.mxu3 %v1066_v43 }
  0x6a   :  { %779 = vmatmul.bf16.gmra.mxu2 %v1052_v11 }
  0x6d   :  { %v414_v54 = vpop.permute.xlu2 %413  ;;  %1143 = vmatpush.bf16.msra.mxu3 %v1065_v45 }
  0x70   :  { %263 = vmatmul.bf16.gmra.mxu0 %v1037_v32 }
  0x75   :  { %v419_v3 = vpop.permute.xlu2 %418 }
  0x7a   :  { %784 = vmatmul.bf16.gmra.mxu2 %v1053_v34 }
  0x7d   :  { %v424_v20 = vpop.permute.xlu2 %423 }
  0x80   :  { %268 = vmatmul.bf16.gmra.mxu0 %v1038_v37 }
  0x82   :  { %v354_v51 = vpop.permute.xlu0 %353 }
  0x84   :  { %v364_v63 = vpop.permute.xlu1 %363 }
  0x85   :  { %v389_v50 = vpop.permute.xlu2 %388 }
  0x8a   :  { %v359_v57 = vpop.permute.xlu0 %358  ;;  %789 = vmatmul.bf16.gmra.mxu2 %v1054_v47 }
  0x8c   :  { %v369_v16 = vpop.permute.xlu1 %368 }
  0x92   :  { %v374_v12 = vpop.permute.xlu0 %373 }
  0x94   :  { %v379_v37 = vpop.permute.xlu1 %378 }
  0x9a   :  { %v429_v25 = vpop.permute.xlu0 %428 }
  0x9c   :  { %v384_v48 = vpop.permute.xlu1 %383 }
  0xad   :  { %v244_v52 = vpop.f32.mrf.mxu0 }
  0xae   :  { %v431_v55 = vmul.f32 %v354_v51, %v244_v52 }
  0xb0   :  { %v447_v59 = vpack.c.bf16 %v431_v55, %v431_v55 }
  0xb2   :  { %v495_v0 = vunpack.c.l.b16 %v447_v59  ;;  %v1056_v59 = vld [vmem:[#allocation8 + $0x38] sm:$0xff] }
  0xb3   :  { %v274_v56 = vpop.f32.mrf.mxu3 }
  0xb4   :  { %v443_v60 = vmul.f32 %v414_v54, %v274_v56 }
  0xb5   :  { %v246_v58 = vpop.f32.mrf.mxu0 }
  0xb6   :  { %v432_v61 = vmul.f32 %v359_v57, %v246_v58  ;;  %v459_v1 = vpack.c.bf16 %v443_v60, %v443_v60  ;;  %v394_v60 = vpop.permute.xlu0 %393 }
  0xb8   :  { %v448_v62 = vpack.c.bf16 %v432_v61, %v432_v61  ;;  %v507_v8 = vunpack.c.l.b16 %v459_v1 }
  0xba   :  { %v496_v2 = vunpack.c.l.b16 %v448_v62  ;;  %v399_v62 = vpop.permute.xlu1 %398 }
  0xbb   :  { %v276_v4 = vpop.f32.mrf.mxu3 }
  0xbc   :  { %v444_v5 = vmul.f32 %v419_v3, %v276_v4  ;;  %v511_v6 = vpack.c.b16 %v496_v2, %v495_v0 }
  0xbd   :  { %v249_v7 = vpop.f32.mrf.mxu0 }
  0xbe   :  { %v460_v9 = vpack.c.bf16 %v444_v5, %v444_v5  ;;  %715 = vmatmul.bf16.vlgmr.msra.gmra.mxu1 %v511_v6  ;;  %v433_v14 = vmul.f32 %v364_v63, %v249_v7  ;;  %v404_v7 = vpop.permute.xlu2 %403 }
  0xc0   :  { %v508_v10 = vunpack.c.l.b16 %v460_v9  ;;  %v449_v18 = vpack.c.bf16 %v433_v14, %v433_v14  ;;  %v409_v9 = vpop.permute.xlu0 %408 }
  0xc2   :  { %v517_v13 = vpack.c.b16 %v508_v10, %v507_v8  ;;  %v497_v23 = vunpack.c.l.b16 %v449_v18 }
  0xc3   :  { %v279_v15 = vpop.f32.mrf.mxu3 }
  0xc4   :  { %745 = vmatmul.bf16.vlgmr.msrb.gmra.mxu3 %v517_v13  ;;  %v445_v21 = vmul.f32 %v424_v20, %v279_v15 }
  0xc5   :  { %v251_v17 = vpop.f32.mrf.mxu0 }
  0xc6   :  { %v434_v19 = vmul.f32 %v369_v16, %v251_v17  ;;  %v461_v27 = vpack.c.bf16 %v445_v21, %v445_v21  ;;  %v765_v17 = vpop.f32.mrf.mxu2  ;;  %v1416_v21 = vld [vmem:[%s1445_s5] ss:$0 sm:$0xff]  ;;  %s1263_s5 = smov [#allocation9]  }
  0xc7   :  { %s857_s24 = sshll.u32 %s1263_s5, 4  ;;  %s858_s24 = int_to_ptr.vmem [resolvable:$true] %s857_s24 }
  0xc8   :  { %v450_v22 = vpack.c.bf16 %v434_v19, %v434_v19  ;;  %v509_v32 = vunpack.c.l.b16 %v461_v27 }
  0xca   :  { %v498_v24 = vunpack.c.l.b16 %v450_v22 }
  0xcb   :  { %v281_v26 = vpop.f32.mrf.mxu3 }
  0xcc   :  { %v446_v28 = vmul.f32 %v429_v25, %v281_v26  ;;  %v512_v29 = vpack.c.b16 %v498_v24, %v497_v23 }
  0xcd   :  { %v254_v30 = vpop.f32.mrf.mxu0 }
  0xce   :  { %v462_v31 = vpack.c.bf16 %v446_v28, %v446_v28  ;;  %720 = vmatmul.bf16.gmra.mxu1 %v512_v29  ;;  %v435_v35 = vmul.f32 %v374_v12, %v254_v30  ;;  %v767_v18 = vpop.f32.mrf.mxu2 }
  0xd0   :  { %v510_v33 = vunpack.c.l.b16 %v462_v31  ;;  %v451_v39 = vpack.c.bf16 %v435_v35, %v435_v35 }
  0xd2   :  { %v518_v36 = vpack.c.b16 %v510_v33, %v509_v32  ;;  %v499_v42 = vunpack.c.l.b16 %v451_v39 }
  0xd4   :  { %750 = vmatmul.bf16.gmra.mxu3 %v518_v36 }
  0xd5   :  { %v256_v38 = vpop.f32.mrf.mxu0 }
  0xd6   :  { %v436_v40 = vmul.f32 %v379_v37, %v256_v38  ;;  %v770_v20 = vpop.f32.mrf.mxu2 }
  0xd8   :  { %v452_v41 = vpack.c.bf16 %v436_v40, %v436_v40 }
  0xda   :  { %v500_v43 = vunpack.c.l.b16 %v452_v41 }
  0xdc   :  { %v513_v44 = vpack.c.b16 %v500_v43, %v499_v42 }
  0xdd   :  { %v259_v45 = vpop.f32.mrf.mxu0 }
  0xde   :  { %725 = vmatmul.bf16.gmra.mxu1 %v513_v44  ;;  %v437_v49 = vmul.f32 %v384_v48, %v259_v45  ;;  %v772_v26 = vpop.f32.mrf.mxu2 }
  0xe0   :  { %v453_v52 = vpack.c.bf16 %v437_v49, %v437_v49 }
  0xe2   :  { %v501_v55 = vunpack.c.l.b16 %v453_v52 }
  0xe4   :  { %794 = vmatmul.bf16.vlgmr.msra.gmra.mxu3 %v1055_v46 }
  0xe5   :  { %v261_v51 = vpop.f32.mrf.mxu0 }
  0xe6   :  { %v438_v53 = vmul.f32 %v389_v50, %v261_v51  ;;  %v775_v34 = vpop.f32.mrf.mxu2 }
  0xe8   :  { %v454_v54 = vpack.c.bf16 %v438_v53, %v438_v53 }
  0xea   :  { %v502_v56 = vunpack.c.l.b16 %v454_v54 }
  0xec   :  { %v514_v57 = vpack.c.b16 %v502_v56, %v501_v55 }
  0xed   :  { %v264_v58 = vpop.f32.mrf.mxu0 }
  0xee   :  { %730 = vmatmul.bf16.gmra.mxu1 %v514_v57  ;;  %v439_v61 = vmul.f32 %v394_v60, %v264_v58  ;;  %v777_v43 = vpop.f32.mrf.mxu2 }
  0xf0   :  { %v455_v0 = vpack.c.bf16 %v439_v61, %v439_v61 }
  0xf2   :  { %v503_v3 = vunpack.c.l.b16 %v455_v0 }
  0xf4   :  { %799 = vmatmul.bf16.gmra.mxu3 %v1056_v59 }
  0xf5   :  { %v266_v63 = vpop.f32.mrf.mxu0 }
  0xf6   :  { %v440_v1 = vmul.f32 %v399_v62, %v266_v63  ;;  %v780_v49 = vpop.f32.mrf.mxu2 }
  0xf8   :  { %v456_v2 = vpack.c.bf16 %v440_v1, %v440_v1 }
  0xfa   :  { %v504_v4 = vunpack.c.l.b16 %v456_v2 }
  0xfc   :  { %v515_v5 = vpack.c.b16 %v504_v4, %v503_v3 }
  0xfd   :  { %v269_v6 = vpop.f32.mrf.mxu0 }
  0xfe   :  { %735 = vmatmul.bf16.gmra.mxu1 %v515_v5  ;;  %v441_v8 = vmul.f32 %v404_v7, %v269_v6  ;;  %v782_v59 = vpop.f32.mrf.mxu2 }
 0x100   :  { %v457_v11 = vpack.c.bf16 %v441_v8, %v441_v8 }
 0x102   :  { %v505_v14 = vunpack.c.l.b16 %v457_v11 }
 0x105   :  { %v271_v10 = vpop.f32.mrf.mxu0 }
 0x106   :  { %v442_v12 = vmul.f32 %v409_v9, %v271_v10  ;;  %v785_v8 = vpop.f32.mrf.mxu2 }
 0x108   :  { %v458_v13 = vpack.c.bf16 %v442_v12, %v442_v12 }
 0x10a   :  { %v506_v15 = vunpack.c.l.b16 %v458_v13 }
 0x10c   :  { %v516_v16 = vpack.c.b16 %v506_v15, %v505_v14 }
 0x10e   :  { %740 = vmatmul.bf16.gmra.mxu1 %v516_v16 }
 0x13b   :  { %v716_v19 = vpop.f32.mrf.mxu1 }
 0x13c   :  { %v717_v22 = vadd.f32 %v1416_v21, %v716_v19 }
 0x13e   :  { %v766_v24 = vadd.f32 %v765_v17, %v717_v22 }
 0x140   :  { %v805_v29 = vmax.f32 %v766_v24, 0.0 }
 0x143   :  { %v718_v23 = vpop.f32.mrf.mxu1 }
 0x144   :  { %v719_v25 = vadd.f32 %v1416_v21, %v718_v23 }
 0x146   :  { %v768_v27 = vadd.f32 %v767_v18, %v719_v25 }
 0x147   :  { %v746_v28 = vpop.f32.mrf.mxu3 }
 0x148   :  { %v806_v30 = vmax.f32 %v768_v27, 0.0  ;;  %v747_v58 = vadd.f32 %v1416_v21, %v746_v28 }
 0x14a   :  { %v1076_v31 = vpack.c.bf16 %v806_v30, %v805_v29 }
 0x14b   :  { %v721_v32 = vpop.f32.mrf.mxu1 }
 0x14c   :  { %1077 = vst [vmem:[#allocation9] sm:$0xff] %v1076_v31   ;;  %v722_v35 = vadd.f32 %v1416_v21, %v721_v32 }
 0x14e   :  { %v771_v37 = vadd.f32 %v770_v20, %v722_v35  ;;  %v787_v20 = vpop.f32.mrf.mxu2 }
 0x14f   :  { %v748_v33 = vpop.f32.mrf.mxu3 }
 0x150   :  { %v807_v41 = vmax.f32 %v771_v37, 0.0  ;;  %v749_v60 = vadd.f32 %v1416_v21, %v748_v33 }
 0x153   :  { %v723_v36 = vpop.f32.mrf.mxu1 }
 0x154   :  { %v724_v38 = vadd.f32 %v1416_v21, %v723_v36 }
 0x156   :  { %v773_v39 = vadd.f32 %v772_v26, %v724_v38  ;;  %v790_v32 = vpop.f32.mrf.mxu2 }
 0x157   :  { %v751_v40 = vpop.f32.mrf.mxu3 }
 0x158   :  { %v808_v42 = vmax.f32 %v773_v39, 0.0  ;;  %v752_v14 = vadd.f32 %v1416_v21, %v751_v40 }
 0x15a   :  { %v1081_v44 = vpack.c.bf16 %v808_v42, %v807_v41 }
 0x15b   :  { %v726_v45 = vpop.f32.mrf.mxu1 }
 0x15c   :  { %1113 = vst [vmem:[#allocation9 + $0x8] sm:$0xff] %v1081_v44   ;;  %v727_v47 = vadd.f32 %v1416_v21, %v726_v45 }
 0x15e   :  { %v776_v50 = vadd.f32 %v775_v34, %v727_v47  ;;  %v792_v38 = vpop.f32.mrf.mxu2 }
 0x15f   :  { %v753_v46 = vpop.f32.mrf.mxu3 }
 0x160   :  { %v809_v54 = vmax.f32 %v776_v50, 0.0  ;;  %v754_v15 = vadd.f32 %v1416_v21, %v753_v46 }
 0x163   :  { %v728_v48 = vpop.f32.mrf.mxu1 }
 0x164   :  { %v729_v51 = vadd.f32 %v1416_v21, %v728_v48 }
 0x166   :  { %v778_v52 = vadd.f32 %v777_v43, %v729_v51 }
 0x167   :  { %v795_v53 = vpop.f32.mrf.mxu3 }
 0x168   :  { %v810_v55 = vmax.f32 %v778_v52, 0.0  ;;  %v796_v61 = vadd.f32 %v795_v53, %v747_v58 }
 0x16a   :  { %v1086_v56 = vpack.c.bf16 %v810_v55, %v809_v54  ;;  %v817_v1 = vmax.f32 %v796_v61, 0.0 }
 0x16b   :  { %v731_v57 = vpop.f32.mrf.mxu1 }
 0x16c   :  { %1114 = vst [vmem:[#allocation9 + $0x10] sm:$0xff] %v1086_v56   ;;  %v732_v63 = vadd.f32 %v1416_v21, %v731_v57 }
 0x16e   :  { %v781_v4 = vadd.f32 %v780_v49, %v732_v63 }
 0x16f   :  { %v797_v62 = vpop.f32.mrf.mxu3 }
 0x170   :  { %v798_v0 = vadd.f32 %v797_v62, %v749_v60  ;;  %v811_v10 = vmax.f32 %v781_v4, 0.0 }
 0x172   :  { %v818_v2 = vmax.f32 %v798_v0, 0.0 }
 0x173   :  { %v733_v3 = vpop.f32.mrf.mxu1 }
 0x174   :  { %v1106_v5 = vpack.c.bf16 %v818_v2, %v817_v1  ;;  %v734_v6 = vadd.f32 %v1416_v21, %v733_v3 }
 0x176   :  { %1118 = vst [vmem:[#allocation9 + $0x30] sm:$0xff] %v1106_v5   ;;  %v783_v7 = vadd.f32 %v782_v59, %v734_v6 }
 0x177   :  { %v800_v9 = vpop.f32.mrf.mxu3 }
 0x178   :  { %v812_v11 = vmax.f32 %v783_v7, 0.0  ;;  %v801_v16 = vadd.f32 %v800_v9, %v752_v14 }
 0x17a   :  { %v1091_v12 = vpack.c.bf16 %v812_v11, %v811_v10  ;;  %v819_v22 = vmax.f32 %v801_v16, 0.0 }
 0x17b   :  { %v736_v13 = vpop.f32.mrf.mxu1 }
 0x17c   :  { %1115 = vst [vmem:[#allocation9 + $0x18] sm:$0xff] %v1091_v12   ;;  %v737_v18 = vadd.f32 %v1416_v21, %v736_v13 }
 0x17e   :  { %v786_v25 = vadd.f32 %v785_v8, %v737_v18 }
 0x17f   :  { %v802_v17 = vpop.f32.mrf.mxu3 }
 0x180   :  { %v803_v19 = vadd.f32 %v802_v17, %v754_v15  ;;  %v813_v29 = vmax.f32 %v786_v25, 0.0 }
 0x182   :  { %v820_v23 = vmax.f32 %v803_v19, 0.0 }
 0x183   :  { %v738_v24 = vpop.f32.mrf.mxu1 }
 0x184   :  { %v1111_v26 = vpack.c.bf16 %v820_v23, %v819_v22  ;;  %v739_v27 = vadd.f32 %v1416_v21, %v738_v24 }
 0x186   :  { %1119 = vst [vmem:[#allocation9 + $0x38] sm:$0xff] %v1111_v26   ;;  %v788_v28 = vadd.f32 %v787_v20, %v739_v27 }
 0x188   :  { %v814_v30 = vmax.f32 %v788_v28, 0.0 }
 0x18a   :  { %v1096_v31 = vpack.c.bf16 %v814_v30, %v813_v29 }
 0x18b   :  { %v741_v33 = vpop.f32.mrf.mxu1 }
 0x18c   :  { %1116 = vst [vmem:[#allocation9 + $0x20] sm:$0xff] %v1096_v31   ;;  %v742_v34 = vadd.f32 %v1416_v21, %v741_v33 }
 0x18e   :  { %v791_v36 = vadd.f32 %v790_v32, %v742_v34 }
 0x190   :  { %v815_v40 = vmax.f32 %v791_v36, 0.0 }
 0x193   :  { %v743_v35 = vpop.f32.mrf.mxu1 }
 0x194   :  { %v744_v37 = vadd.f32 %v1416_v21, %v743_v35 }
 0x196   :  { %v793_v39 = vadd.f32 %v792_v38, %v744_v37 }
 0x198   :  { %v816_v41 = vmax.f32 %v793_v39, 0.0 }
 0x19a   :  { %v1101_v42 = vpack.c.bf16 %v816_v41, %v815_v40 }
 0x19c   :  { %1117 = vst [vmem:[#allocation9 + $0x28] sm:$0xff] %v1101_v42  }
 0x19d   :  { %865 = dma.vmem_to_hbm [thread:$0]  %s858_s24, 1024, %s860_s27, [#allocation5], %s1258_s29, %s1258_s29, %s1259_s30  }
 0x19e   :  { %1255 = dma.done.wait [#allocation5], 1024  }
 0x19f   :  { %1256 = vsyncadd [#allocation5], 4294966272 }
 0x1a0   :  { %870 = vsyncpa [#allocation4], 1 }
 0x1a1   :  { %871 = vsyncpa [#allocation7], 1 }
 0x1a2   :  { %872 = vsyncpa [#allocation5], 1 }

</bundles_post_ra>
